<compile_context>
chip_gen: v5e
topology: v5e:2x2
jax: 0.10.0
libtpu: 0.0.40
codegen_flags: <defaults>
</compile_context>

<pallas_src>
import math

import jax
import jax.numpy as jnp
from jax.experimental import pallas as pl
from jax.experimental.pallas import tpu as pltpu


def _round_up(x, m):
    return ((x + m - 1) // m) * m


def _pick_feature_tile(f_pad):
    # Multiples of 256 fill the v6e/v7x 256-wide MXUs; 128 is enough on v5e.
    for t in (512, 256, 128):
        if f_pad % t == 0:
            return t
    return 128


def symlinear_kernel_single_k(x_ref, w_kn_ref, w_nk_ref, b_ref, o_ref):
    # grid K == 1: whole reduction in one step, no scratch accumulator needed.
    w_sym = w_kn_ref[...] + w_nk_ref[...].T
    acc = jnp.dot(x_ref[...], w_sym, preferred_element_type=jnp.float32)
    o_ref[...] = (acc + b_ref[...]).astype(o_ref.dtype)


def symlinear_kernel_multi_k(x_ref, w_kn_ref, w_nk_ref, b_ref, o_ref, acc_ref):
    k = pl.program_id(2)

    @pl.when(k == 0)
    def _init():
        acc_ref[...] = jnp.zeros_like(acc_ref)

    # Effective symmetric weight tile:
    #   W_sym[kblk, nblk] = W[kblk, nblk] + W[nblk, kblk].T
    w_sym = w_kn_ref[...] + w_nk_ref[...].T
    acc_ref[...] += jnp.dot(x_ref[...], w_sym,
                            preferred_element_type=jnp.float32)

    @pl.when(k == pl.num_programs(2) - 1)
    def _finalize():
        o_ref[...] = (acc_ref[...] + b_ref[...]).astype(o_ref.dtype)


def sym_linear(x, weight, bias=None):
    """x: [M, F], weight: [F, F] (square), bias: [F] or None."""
    M, F = x.shape
    assert weight.shape == (F, F), "SymLinear requires a square weight"
    if bias is None:
        bias = jnp.zeros((F,), x.dtype)

    # Pad feature dim to a lane-dense multiple of 128; batch dim to a multiple of 8.
    F_pad = _round_up(F, 128)
    tn = tk = _pick_feature_tile(F_pad)
    M_pad = _round_up(M, 8)
    tm = min(256, M_pad)
    M_pad = _round_up(M_pad, tm)

    x_p = jnp.pad(x, ((0, M_pad - M), (0, F_pad - F)))
    w_p = jnp.pad(weight, ((0, F_pad - F), (0, F_pad - F)))
    b_p = jnp.pad(bias, (0, F_pad - F)).reshape(1, F_pad)

    grid = (M_pad // tm, F_pad // tn, F_pad // tk)
    single_k = grid[2] == 1

    in_specs = [
        pl.BlockSpec((tm, tk), lambda i, j, k: (i, k)),  # x tile
        pl.BlockSpec((tk, tn), lambda i, j, k: (k, j)),  # W[kblk, nblk]
        pl.BlockSpec((tn, tk), lambda i, j, k: (j, k)),  # W[nblk, kblk]
        pl.BlockSpec((1, tn), lambda i, j, k: (0, j)),   # bias (K-invariant)
    ]
    out_spec = pl.BlockSpec((tm, tn), lambda i, j, k: (i, j))

    # Advisory cost estimate for XLA scheduling.
    flops = 2 * M_pad * F_pad * F_pad + F_pad * F_pad
    bytes_accessed = 4 * (x_p.size * grid[1] + 2 * w_p.size * grid[0]
                          + b_p.size * grid[0] + M_pad * F_pad)

    kernel = symlinear_kernel_single_k if single_k else symlinear_kernel_multi_k
    scratch = [] if single_k else [pltpu.VMEM((tm, tn), jnp.float32)]

    out = pl.pallas_call(
        kernel,
        out_shape=jax.ShapeDtypeStruct((M_pad, F_pad), x.dtype),
        grid_spec=pltpu.PrefetchScalarGridSpec(
            num_scalar_prefetch=0,
            grid=grid,
            in_specs=in_specs,
            out_specs=out_spec,
            scratch_shapes=scratch,
        ),
        compiler_params=pltpu.CompilerParams(
            dimension_semantics=("parallel", "parallel", "arbitrary")),
        cost_estimate=pl.CostEstimate(
            flops=flops, transcendentals=0, bytes_accessed=bytes_accessed),
    )(x_p, w_p, w_p, b_p)

    return out[:M, :F]


def init_symlinear_params(key, features):
    """Deterministic init mirroring SymLinear.reset_parameters."""
    kw, kb = jax.random.split(key)
    fan_in = features
    # kaiming_uniform_(a=sqrt(5)) -> bound = sqrt(6 / ((1 + a^2) * fan_in)) = 1/sqrt(fan_in)
    w_bound = 1.0 / math.sqrt(fan_in)
    weight = jax.random.uniform(kw, (features, features), jnp.float32,
                                minval=-w_bound, maxval=w_bound)
    b_bound = 1.0 / math.sqrt(fan_in)
    bias = jax.random.uniform(kb, (features,), jnp.float32,
                              minval=-b_bound, maxval=b_bound)
    return weight, bias


def _reference(x, weight, bias):
    w_sym = weight + weight.T
    return jnp.dot(x, w_sym, precision=jax.lax.Precision.HIGHEST) + bias


if __name__ == "__main__":
    key = jax.random.PRNGKey(0)
    k_x1, k_p1, k_x2, k_p2 = jax.random.split(key, 4)

    # Case 1: shapes implied by the module (batch=8, features=32) -> single-K kernel.
    M1, F1 = 8, 32
    x1 = jax.random.normal(k_x1, (M1, F1), jnp.float32)
    w1, b1 = init_symlinear_params(k_p1, F1)
    y1 = jax.block_until_ready(sym_linear(x1, w1, b1))
    assert jnp.allclose(y1, _reference(x1, w1, b1), atol=1e-4, rtol=1e-4), \
        "mismatch vs reference (small case)"

    # Case 2: non-multiple-of-128 features -> exercises padding + multi-step
    # K accumulation (F_pad=384, 128-wide tiles, 3 K steps).
    M2, F2 = 10, 300
    x2 = jax.random.normal(k_x2, (M2, F2), jnp.float32)
    w2, b2 = init_symlinear_params(k_p2, F2)
    y2 = jax.block_until_ready(sym_linear(x2, w2, b2))
    assert jnp.allclose(y2, _reference(x2, w2, b2), atol=1e-4, rtol=1e-4), \
        "mismatch vs reference (tiled case)"

    print("KERNEL_OK")
</pallas_src>

<mosaic_0001>
module attributes {stable_mosaic.version = 11 : i64} {
  func.func @symlinear_kernel_single_k(%arg0: i32, %arg1: i32, %arg2: i32, %arg3: memref<8x128xf32, #tpu.memory_space<vmem>>, %arg4: memref<128x128xf32, #tpu.memory_space<vmem>>, %arg5: memref<128x128xf32, #tpu.memory_space<vmem>>, %arg6: memref<1x128xf32, #tpu.memory_space<vmem>>, %arg7: memref<8x128xf32, #tpu.memory_space<vmem>>) attributes {dimension_semantics = [#tpu.dimension_semantics<parallel>, #tpu.dimension_semantics<parallel>, #tpu.dimension_semantics<arbitrary>], iteration_bounds = array<i64: 1, 1, 1>, scalar_prefetch = 0 : i64, scratch_operands = 0 : i64, tpu.core_type = #tpu.core_type<tc>, window_params = [{transform_indices = @transform_0, window_bounds = array<i64: 8, 128>}, {transform_indices = @transform_1, window_bounds = array<i64: 128, 128>}, {transform_indices = @transform_2, window_bounds = array<i64: 128, 128>}, {transform_indices = @transform_3, window_bounds = array<i64: 1, 128>}, {transform_indices = @transform_4, window_bounds = array<i64: 8, 128>}]} {
    %c0 = arith.constant 0 : index
    %c0_0 = arith.constant 0 : index
    %0 = vector.load %arg4[%c0, %c0_0] : memref<128x128xf32, #tpu.memory_space<vmem>>, vector<128x128xf32>
    %c0_1 = arith.constant 0 : index
    %c0_2 = arith.constant 0 : index
    %1 = vector.load %arg5[%c0_1, %c0_2] : memref<128x128xf32, #tpu.memory_space<vmem>>, vector<128x128xf32>
    %2 = tpu.transpose %1, [1, 0] : vector<128x128xf32> -> vector<128x128xf32>
    %3 = arith.addf %0, %2 : vector<128x128xf32>
    %c0_3 = arith.constant 0 : index
    %c0_4 = arith.constant 0 : index
    %4 = vector.load %arg3[%c0_3, %c0_4] : memref<8x128xf32, #tpu.memory_space<vmem>>, vector<8x128xf32>
    %cst = arith.constant dense<0.000000e+00> : vector<8x128xf32>
    %5 = tpu.matmul %4, %3, %cst {dimension_numbers = #tpu.dot_dimension_numbers<[1], [0], [0], [1], [0, 0, 1, 1], [], []>} : vector<8x128xf32>, vector<128x128xf32>, vector<8x128xf32> -> vector<8x128xf32>
    %c0_5 = arith.constant 0 : index
    %c0_6 = arith.constant 0 : index
    %6 = vector.load %arg6[%c0_5, %c0_6] : memref<1x128xf32, #tpu.memory_space<vmem>>, vector<1x128xf32>
    %7 = vector.broadcast %6 : vector<1x128xf32> to vector<8x128xf32>
    %8 = arith.addf %5, %7 : vector<8x128xf32>
    %c0_7 = arith.constant 0 : index
    %c0_8 = arith.constant 0 : index
    %9 = vector.load %arg7[%c0_7, %c0_8] : memref<8x128xf32, #tpu.memory_space<vmem>>, vector<8x128xf32>
    tpu.vector_store %arg7[%c0_7, %c0_8], %8 {strides = array<i32>} : memref<8x128xf32, #tpu.memory_space<vmem>>, vector<8x128xf32>,
    return
  }
  func.func @transform_0(%arg0: i32, %arg1: i32, %arg2: i32) -> (i32, i32) {
    %c0_i32 = arith.constant 0 : i32
    return %arg0, %arg2 : i32, i32
  }
  func.func @transform_1(%arg0: i32, %arg1: i32, %arg2: i32) -> (i32, i32) {
    %c0_i32 = arith.constant 0 : i32
    return %arg2, %arg1 : i32, i32
  }
  func.func @transform_2(%arg0: i32, %arg1: i32, %arg2: i32) -> (i32, i32) {
    %c0_i32 = arith.constant 0 : i32
    return %arg1, %arg2 : i32, i32
  }
  func.func @transform_3(%arg0: i32, %arg1: i32, %arg2: i32) -> (i32, i32) {
    %c0_i32 = arith.constant 0 : i32
    %c0_i32_0 = arith.constant 0 : i32
    return %c0_i32, %arg1 : i32, i32
  }
  func.func @transform_4(%arg0: i32, %arg1: i32, %arg2: i32) -> (i32, i32) {
    %c0_i32 = arith.constant 0 : i32
    return %arg0, %arg1 : i32, i32
  }
}

</mosaic_0001>

<bundles_post_ra>
// kernel: tpu_custom_call.1
= control target key start
LH: loop header
LB: loop body
LE: loop exit
PB: predicated region body
PF: predicated region fallthrough
CT: control target
= control target key end

     0   :  { %9 = vsyncpa [#allocation3], 0  ;;  %s342_s0 = inlined_call_operand.hbm [shape: f32[8,128], index: 0, kind: input, shape index: {}]   ;;  %s343_s1 = inlined_call_operand.hbm [shape: f32[128,128], index: 1, kind: input, shape index: {}]   ;;  %s344_s2 = inlined_call_operand.hbm [shape: f32[128,128], index: 2, kind: input, shape index: {}]   ;;  %s345_s3 = inlined_call_operand.vmem [shape: f32[1,128], index: 3, kind: input, shape index: {}]   ;;  %s346_s4 = inlined_call_operand.hbm [shape: f32[8,128], index: 4, kind: output, shape index: {}]  }
   0x1   :  { %10 = vsyncpa [#allocation6], 0  ;;  %s27_s17 = sshll.u32 %s343_s1, 4  ;;  %s28_s17 = int_to_ptr.hbm [resolvable:$true] %s27_s17 }
   0x2   :  { %11 = vsyncpa [#allocation4], 0  ;;  %s296_s18 = smov [#allocation5]   ;;  %s17_s22 = sshll.u32 %s342_s0, 4  ;;  %s18_s22 = int_to_ptr.hbm [resolvable:$true] %s17_s22 }
   0x3   :  { %s29_s19 = sshll.u32 %s296_s18, 4  ;;  %s297_s23 = smov 128   ;;  %s30_s19 = int_to_ptr.vmem [resolvable:$true] %s29_s19 }
   0x4   :  { %s298_s24 = smov 8   ;;  %s299_s25 = smov [#allocation2]  }
   0x5   :  { %35 = dma.hbm_to_vmem [thread:$0]  %s28_s17, 2048, %s30_s19, [#allocation6], %s297_s23, %s297_s23, %s298_s24  }
   0x6   :  { %s19_s26 = sshll.u32 %s299_s25, 4  ;;  %s40_s29 = sshll.u32 %s344_s2, 4  ;;  %s20_s26 = int_to_ptr.vmem [resolvable:$true] %s19_s26  ;;  %s41_s29 = int_to_ptr.hbm [resolvable:$true] %s40_s29 }
   0x7   :  { %22 = dma.hbm_to_vmem [thread:$0]  %s18_s22, 128, %s20_s26, [#allocation3]  }
   0x8   :  { %s300_s1 = smov [#allocation7]  }
   0x9   :  { %s42_s30 = sshll.u32 %s300_s1, 4  ;;  %s43_s30 = int_to_ptr.vmem [resolvable:$true] %s42_s30 }
   0xa   :  { %48 = dma.hbm_to_vmem [thread:$0]  %s41_s29, 2048, %s43_s30, [#allocation6], %s297_s23, %s297_s23, %s298_s24  }
   0xb   :  { %290 = dma.done.wait [#allocation3], 128  }
   0xc   :  { %291 = vsyncadd [#allocation3], 4294967168 }
   0xd   :  { %292 = dma.done.wait [#allocation6], 4096  }
   0xe   :  { %293 = vsyncadd [#allocation6], 4294963200  ;;  %v79_v0 = vld [vmem:[#allocation7] sm:$0xff]  ;;  %v80_v1 = vld [vmem:[#allocation7 + $0x8] sm:$0xff]  ;;  %s301_s5 = smov [#allocation8]   ;;  %s176_s9 = sshll.u32 %s346_s4, 4  ;;  %s177_s9 = int_to_ptr.hbm [resolvable:$true] %s176_s9 }
   0xf   :  { %95 = vxpose.xlu0.b32.start [1/16] %v79_v0, 128  ;;  %v81_v2 = vld [vmem:[#allocation7 + $0x10] sm:$0xff]  ;;  %v82_v3 = vld [vmem:[#allocation7 + $0x18] sm:$0xff]  ;;  %v83_v4 = vld [vmem:[#allocation7 + $0x20] sm:$0xff]  ;;  %s174_s6 = sshll.u32 %s301_s5, 4  ;;  %s175_s6 = int_to_ptr.vmem [resolvable:$true] %s174_s6 }
  0x10   :  { %v84_v5 = vld [vmem:[#allocation7 + $0x28] sm:$0xff]  ;;  %v85_v6 = vld [vmem:[#allocation7 + $0x30] sm:$0xff]  ;;  %v86_v7 = vld [vmem:[#allocation7 + $0x38] sm:$0xff] }
  0x11   :  { %v87_v8 = vld [vmem:[#allocation7 + $0x40] sm:$0xff]  ;;  %v88_v9 = vld [vmem:[#allocation7 + $0x48] sm:$0xff]  ;;  %v89_v10 = vld [vmem:[#allocation7 + $0x50] sm:$0xff] }
  0x12   :  { %v90_v11 = vld [vmem:[#allocation7 + $0x58] sm:$0xff]  ;;  %v91_v12 = vld [vmem:[#allocation7 + $0x60] sm:$0xff]  ;;  %v92_v13 = vld [vmem:[#allocation7 + $0x68] sm:$0xff] }
  0x13   :  { %v93_v14 = vld [vmem:[#allocation7 + $0x70] sm:$0xff]  ;;  %v94_v15 = vld [vmem:[#allocation7 + $0x78] sm:$0xff]  ;;  %v76_v35 = vld [vmem:[#allocation5 + $0x68] sm:$0xff] }
  0x14   :  { %v78_v31 = vld [vmem:[#allocation5 + $0x78] sm:$0xff]  ;;  %v77_v32 = vld [vmem:[#allocation5 + $0x70] sm:$0xff]  ;;  %v75_v37 = vld [vmem:[#allocation5 + $0x60] sm:$0xff] }
  0x15   :  { %v74_v39 = vld [vmem:[#allocation5 + $0x58] sm:$0xff]  ;;  %v73_v41 = vld [vmem:[#allocation5 + $0x50] sm:$0xff]  ;;  %v72_v43 = vld [vmem:[#allocation5 + $0x48] sm:$0xff] }
  0x16   :  { %v71_v45 = vld [vmem:[#allocation5 + $0x40] sm:$0xff]  ;;  %v70_v47 = vld [vmem:[#allocation5 + $0x38] sm:$0xff]  ;;  %v69_v49 = vld [vmem:[#allocation5 + $0x30] sm:$0xff] }
  0x17   :  { %96 = vxpose.xlu0.b32.cont [2/16] %v80_v1, 128  ;;  %v68_v51 = vld [vmem:[#allocation5 + $0x28] sm:$0xff]  ;;  %v67_v53 = vld [vmem:[#allocation5 + $0x20] sm:$0xff]  ;;  %v66_v55 = vld [vmem:[#allocation5 + $0x18] sm:$0xff] }
  0x18   :  { %v65_v57 = vld [vmem:[#allocation5 + $0x10] sm:$0xff]  ;;  %v64_v59 = vld [vmem:[#allocation5 + $0x8] sm:$0xff]  ;;  %v63_v61 = vld [vmem:[#allocation5] sm:$0xff] }
  0x19   :  { %v143_v0 = vld [vmem:[#allocation2] sm:$0xff] }
  0x1a   :  { %v193_v1 = vld [vmem:[%s345_s3] ss:$0 sm:$0xff] }
  0x1f   :  { %97 = vxpose.xlu0.b32.cont [3/16] %v81_v2, 128 }
  0x27   :  { %98 = vxpose.xlu0.b32.cont [4/16] %v82_v3, 128 }
  0x2f   :  { %99 = vxpose.xlu0.b32.cont [5/16] %v83_v4, 128 }
  0x37   :  { %100 = vxpose.xlu0.b32.cont [6/16] %v84_v5, 128 }
  0x3f   :  { %101 = vxpose.xlu0.b32.cont [7/16] %v85_v6, 128 }
  0x47   :  { %102 = vxpose.xlu0.b32.cont [8/16] %v86_v7, 128 }
  0x4f   :  { %103 = vxpose.xlu0.b32.cont [9/16] %v87_v8, 128 }
  0x57   :  { %104 = vxpose.xlu0.b32.cont [10/16] %v88_v9, 128 }
  0x5f   :  { %105 = vxpose.xlu0.b32.cont [11/16] %v89_v10, 128 }
  0x67   :  { %106 = vxpose.xlu0.b32.cont [12/16] %v90_v11, 128 }
  0x6f   :  { %107 = vxpose.xlu0.b32.cont [13/16] %v91_v12, 128 }
  0x77   :  { %108 = vxpose.xlu0.b32.cont [14/16] %v92_v13, 128 }
  0x7f   :  { %109 = vxpose.xlu0.b32.cont [15/16] %v93_v14, 128 }
  0x87   :  { %110 = vxpose.xlu0.b32.end [16/16] %v94_v15, 128 }
  0xb3   :  { %v111_v16 = vpop.trf.xlu0 }
  0xb4   :  { %v127_v63 = vadd.f32 %v111_v16, %v63_v61 }
  0xbb   :  { %v112_v17 = vpop.trf.xlu0 }
  0xbc   :  { %v128_v62 = vadd.f32 %v112_v17, %v64_v59 }
  0xc3   :  { %v113_v18 = vpop.trf.xlu0 }
  0xc4   :  { %v129_v60 = vadd.f32 %v113_v18, %v65_v57 }
  0xcb   :  { %v114_v19 = vpop.trf.xlu0 }
  0xcc   :  { %v130_v58 = vadd.f32 %v114_v19, %v66_v55 }
  0xd3   :  { %v115_v20 = vpop.trf.xlu0 }
  0xd4   :  { %v131_v56 = vadd.f32 %v115_v20, %v67_v53 }
  0xdb   :  { %v116_v21 = vpop.trf.xlu0 }
  0xdc   :  { %v132_v54 = vadd.f32 %v116_v21, %v68_v51 }
  0xe3   :  { %v117_v22 = vpop.trf.xlu0 }
  0xe4   :  { %v133_v52 = vadd.f32 %v117_v22, %v69_v49 }
  0xeb   :  { %v118_v23 = vpop.trf.xlu0 }
  0xec   :  { %v134_v50 = vadd.f32 %v118_v23, %v70_v47 }
  0xf3   :  { %v119_v24 = vpop.trf.xlu0 }
  0xf4   :  { %v135_v48 = vadd.f32 %v119_v24, %v71_v45 }
  0xfb   :  { %v120_v25 = vpop.trf.xlu0 }
  0xfc   :  { %v136_v46 = vadd.f32 %v120_v25, %v72_v43 }
 0x103   :  { %v121_v26 = vpop.trf.xlu0 }
 0x104   :  { %v137_v44 = vadd.f32 %v121_v26, %v73_v41 }
 0x10b   :  { %v122_v27 = vpop.trf.xlu0 }
 0x10c   :  { %v138_v42 = vadd.f32 %v122_v27, %v74_v39 }
 0x113   :  { %v123_v28 = vpop.trf.xlu0 }
 0x114   :  { %v139_v40 = vadd.f32 %v123_v28, %v75_v37 }
 0x11b   :  { %v124_v29 = vpop.trf.xlu0 }
 0x11c   :  { %v140_v38 = vadd.f32 %v124_v29, %v76_v35 }
 0x123   :  { %v125_v30 = vpop.trf.xlu0 }
 0x124   :  { %v141_v36 = vadd.f32 %v125_v30, %v77_v32 }
 0x12b   :  { %v126_v33 = vpop.trf.xlu0 }
 0x12c   :  { %v142_v34 = vadd.f32 %v126_v33, %v78_v31 }
 0x12e   :  { %148 = vmatpush.msra.mxu0 %v142_v34 }
 0x130   :  { %149 = vmatpush.msra.mxu0 %v141_v36 }
 0x132   :  { %150 = vmatpush.msra.mxu0 %v140_v38 }
 0x134   :  { %151 = vmatpush.msra.mxu0 %v139_v40 }
 0x136   :  { %152 = vmatpush.msra.mxu0 %v138_v42 }
 0x138   :  { %153 = vmatpush.msra.mxu0 %v137_v44 }
 0x13a   :  { %154 = vmatpush.msra.mxu0 %v136_v46 }
 0x13c   :  { %155 = vmatpush.msra.mxu0 %v135_v48 }
 0x13e   :  { %156 = vmatpush.msra.mxu0 %v134_v50 }
 0x140   :  { %157 = vmatpush.msra.mxu0 %v133_v52 }
 0x142   :  { %158 = vmatpush.msra.mxu0 %v132_v54 }
 0x144   :  { %159 = vmatpush.msra.mxu0 %v131_v56 }
 0x146   :  { %160 = vmatpush.msra.mxu0 %v130_v58 }
 0x148   :  { %161 = vmatpush.msra.mxu0 %v129_v60 }
 0x14a   :  { %162 = vmatpush.msra.mxu0 %v128_v62 }
 0x14c   :  { %163 = vmatpush.msra.mxu0 %v127_v63 }
 0x14d   :  { %164 = vmatmul.f32.vlgmr.msra.gmra.mxu0 %v143_v0 }
 0x1ca   :  { %v165_v2 = vpop.f32.mrf.mxu0 }
 0x1cb   :  { %v166_v3 = vadd.f32 %v193_v1, %v165_v2 }
 0x1cd   :  { %168 = vst [vmem:[#allocation8] sm:$0xff] %v166_v3 }
 0x1ce   :  { %179 = dma.vmem_to_hbm [thread:$0]  %s175_s6, 128, %s177_s9, [#allocation4]  }
 0x1cf   :  { %294 = dma.done.wait [#allocation4], 128  }
 0x1d0   :  { %295 = vsyncadd [#allocation4], 4294967168 }
 0x1d1   :  { %184 = vsyncpa [#allocation3], 1 }
 0x1d2   :  { %185 = vsyncpa [#allocation6], 1 }
 0x1d3   :  { %186 = vsyncpa [#allocation4], 1 }

</bundles_post_ra>
